<compile_context>
chip_gen: v7x
topology: tpu7x:2x2x1
jax: 0.10.0
libtpu: 0.0.40
codegen_flags: <defaults>
</compile_context>

<pallas_src>
import functools

import jax
import jax.numpy as jnp
from jax import lax
from jax.experimental import pallas as pl
from jax.experimental.pallas import tpu as pltpu


def _round_up(x: int, m: int) -> int:
    return ((x + m - 1) // m) * m


def _attn_kernel(x_ref, wqkv_ref, *rest, d_pad: int, seq_valid: int, has_bias: bool):
    """One batch element, fully VMEM-resident.

    x_ref    : (S_pad, d_in_pad)   input, operand dtype (f32 or bf16)
    wqkv_ref : (d_in_pad, 3*d_pad) fused [Wq | Wk | Wv] (Q pre-scaled), operand dtype
    bias_ref : (1, 3*d_pad)        f32 fused bias row (only when has_bias)
    o_ref    : (S_pad, d_pad)      f32 lane-dense padded output
    """
    if has_bias:
        bias_ref, o_ref = rest
    else:
        (o_ref,) = rest

    od = x_ref.dtype
    # f32 operands: force the accurate MXU path so results match a true-f32
    # reference; bf16 operands are already exact (f32 accumulation either way).
    dot_kwargs = dict(preferred_element_type=jnp.float32)
    if od == jnp.float32:
        dot_kwargs["precision"] = lax.Precision.HIGHEST

    # One fused QKV projection matmul: (S_pad, d_in_pad) @ (d_in_pad, 3*d_pad).
    qkv = jnp.dot(x_ref[...], wqkv_ref[...], **dot_kwargs)
    if has_bias:
        qkv = qkv + bias_ref[...]                 # broadcast VPU add (free filler)

    q = qkv[:, 0 * d_pad:1 * d_pad].astype(od)    # 128-aligned lane slices
    k = qkv[:, 1 * d_pad:2 * d_pad].astype(od)
    v = qkv[:, 2 * d_pad:3 * d_pad].astype(od)

    # scores = (q / sqrt(d_out)) @ k.T  (scale already folded into Wq).
    # NT form: contract last dims, no explicit transpose / XLU pass.
    scores = lax.dot_general(q, k, dimension_numbers=(((1,), (1,)), ((), ())),
                             **dot_kwargs)        # (S_pad, S_pad) f32

    # Mask padded key columns (only generated when seq was actually padded).
    if seq_valid < scores.shape[-1]:
        col = lax.broadcasted_iota(jnp.int32, (1, scores.shape[-1]), 1)
        scores = jnp.where(col < seq_valid, scores, -1e30)

    # Numerically-stable softmax, kept in f32 (v5e-safe: no bf16 VPU/EUP).
    m = jnp.max(scores, axis=-1, keepdims=True)
    e = jnp.exp(scores - m)
    denom = jnp.sum(e, axis=-1, keepdims=True)

    # Normalize AFTER the PV matmul; exact reciprocal (approx rcp breaks 1e-4
    # parity with the PyTorch reference).
    o_unnorm = jnp.dot(e.astype(od), v, **dot_kwargs)   # (S_pad, d_pad) f32
    o_ref[...] = (o_unnorm * (1.0 / denom)).astype(o_ref.dtype)


def self_attention_v2(x, w_query, w_key, w_value,
                      b_query=None, b_key=None, b_value=None,
                      *, operand_dtype=jnp.float32):
    """SelfAttention_v2 forward.

    x   : (seq, d_in) or (batch, seq, d_in) float32
    w_* : (d_out, d_in) nn.Linear weights (y = x @ W.T + b); b_* optional (d_out,)
    operand_dtype : dtype fed to the MXU matmuls.  jnp.bfloat16 -> fast bf16 MXU
        path (f32 accumulation, f32 softmax); jnp.float32 -> exact parity with
        the PyTorch module.
    returns (seq, d_out) / (batch, seq, d_out) float32
    """
    x = jnp.asarray(x)
    squeeze = x.ndim == 2
    if squeeze:
        x = x[None]
    B, seq, d_in = x.shape
    d_out = w_query.shape[0]
    scale = 1.0 / float(d_out) ** 0.5

    od = jnp.dtype(operand_dtype)
    sub = 16 if od.itemsize == 2 else 8       # sublane multiple for the dtype
    d_pad = _round_up(d_out, 128)             # lane-dense Q/K/V blocks
    d_in_pad = _round_up(d_in, 128)           # no +1: bias is its own operand
    s_pad = _round_up(seq, sub)

    has_bias = any(b is not None for b in (b_query, b_key, b_value))

    # --- operand prep (x-independent parts can be cached per weight set) ------
    # TODO(synk): hoist w_qkv / bias_row construction out of the per-call path
    # (or jit the caller so it constant-folds) when weights are reused.
    x_pad = jnp.zeros((B, s_pad, d_in_pad), od)
    x_pad = x_pad.at[:, :seq, :d_in].set(x.astype(od))

    def _wblock(w, s):
        blk = jnp.zeros((d_in_pad, d_pad), jnp.float32)
        blk = blk.at[:d_in, :d_out].set(w.T.astype(jnp.float32) * s)
        return blk.astype(od)

    # Fused [Wq | Wk | Wv]; 1/sqrt(d_out) folded into the Q block.
    w_qkv = jnp.concatenate([_wblock(w_query, scale),
                             _wblock(w_key, 1.0),
                             _wblock(w_value, 1.0)], axis=1)   # (d_in_pad, 3*d_pad)

    operands = [x_pad, w_qkv]
    in_specs = [
        pl.BlockSpec((None, s_pad, d_in_pad), lambda b: (b, 0, 0)),
        pl.BlockSpec((d_in_pad, 3 * d_pad), lambda b: (0, 0)),
    ]
    if has_bias:
        def _brow(bvec, s):
            row = jnp.zeros((d_pad,), jnp.float32)
            if bvec is not None:
                row = row.at[:d_out].set(bvec.astype(jnp.float32) * s)
            return row
        bias_row = jnp.concatenate([_brow(b_query, scale), _brow(b_key, 1.0),
                                    _brow(b_value, 1.0)])[None, :]  # (1, 3*d_pad) f32
        operands.append(bias_row)
        in_specs.append(pl.BlockSpec((1, 3 * d_pad), lambda b: (0, 0)))

    kernel = functools.partial(_attn_kernel, d_pad=d_pad, seq_valid=seq,
                               has_bias=has_bias)

    # --- scheduling hints ------------------------------------------------------
    flops = 2 * B * (s_pad * d_in_pad * 3 * d_pad      # fused QKV projection
                     + s_pad * s_pad * d_pad           # q @ k.T
                     + s_pad * s_pad * d_pad)          # e @ v
    bytes_accessed = (B * s_pad * d_in_pad * od.itemsize       # x
                      + d_in_pad * 3 * d_pad * od.itemsize     # W_qkv
                      + (3 * d_pad * 4 if has_bias else 0)     # bias row
                      + B * s_pad * d_pad * 4)                 # output
    cost = pl.CostEstimate(flops=flops, transcendentals=B * s_pad * s_pad,
                           bytes_accessed=bytes_accessed)

    # VMEM budget: double-buffered operands/output + f32 intermediates (qkv,
    # scores, exp).  Capped below v7x's 64 MiB physical VMEM.
    vmem_bytes = (2 * (s_pad * d_in_pad + d_in_pad * 3 * d_pad + 3 * d_pad) * od.itemsize
                  + 2 * s_pad * d_pad * 4
                  + (s_pad * 3 * d_pad + 2 * s_pad * s_pad + s_pad * d_pad) * 4
                  + (2 << 20))
    vmem_bytes = int(min(64 << 20, max(16 << 20, vmem_bytes)))

    out_pad = pl.pallas_call(
        kernel,
        out_shape=jax.ShapeDtypeStruct((B, s_pad, d_pad), jnp.float32),
        grid=(B,),                                    # batch axis -> pipelined DMAs
        in_specs=in_specs,
        out_specs=pl.BlockSpec((None, s_pad, d_pad), lambda b: (b, 0, 0)),
        compiler_params=pltpu.CompilerParams(
            dimension_semantics=("parallel",),        # shards over v7x's 2 TCs
            vmem_limit_bytes=vmem_bytes),
        cost_estimate=cost,
    )(*operands)

    out = out_pad[:, :seq, :d_out]
    return out[0] if squeeze else out


def self_attention_v2_ref(x, w_query, w_key, w_value,
                          b_query=None, b_key=None, b_value=None):
    """Pure-JAX reference with exact nn.Linear / f32 semantics (x @ W.T + b)."""
    hp = lax.Precision.HIGHEST     # keep the backend from demoting f32 dots
    def lin(w, b):
        y = jnp.dot(x, w.T, precision=hp)
        return y if b is None else y + b
    queries = lin(w_query, b_query)
    keys = lin(w_key, b_key)
    values = lin(w_value, b_value)
    attn_scores = jnp.dot(queries, keys.T, precision=hp)
    attn_weights = jax.nn.softmax(attn_scores / keys.shape[-1] ** 0.5, axis=-1)
    return jnp.dot(attn_weights, values, precision=hp)


def self_attention_v2_mixed_ref(x, w_query, w_key, w_value,
                                b_query=None, b_key=None, b_value=None,
                                *, operand_dtype=jnp.bfloat16):
    """Reference mirroring the kernel's mixed-precision (bf16-operand) path."""
    d_out = w_query.shape[0]
    scale = 1.0 / float(d_out) ** 0.5
    od = jnp.dtype(operand_dtype)

    def lin(w, b, s):
        y = jnp.dot(x.astype(od), (w.T.astype(jnp.float32) * s).astype(od),
                    preferred_element_type=jnp.float32)
        if b is not None:
            y = y + b.astype(jnp.float32) * s
        return y

    q = lin(w_query, b_query, scale)
    k = lin(w_key, b_key, 1.0)
    v = lin(w_value, b_value, 1.0)
    scores = jnp.dot(q.astype(od), k.astype(od).T,
                     preferred_element_type=jnp.float32)
    m = jnp.max(scores, axis=-1, keepdims=True)
    e = jnp.exp(scores - m)
    denom = jnp.sum(e, axis=-1, keepdims=True)
    o = jnp.dot(e.astype(od), v.astype(od), preferred_element_type=jnp.float32)
    return o * (1.0 / denom)


if __name__ == "__main__":
    key = jax.random.PRNGKey(0)
    k_x, k_q, k_k, k_v, k_bq, k_bk, k_bv, k_x2, k_x3 = jax.random.split(key, 9)

    seq, d_in, d_out = 8, 32, 32
    x = jax.random.normal(k_x, (seq, d_in), dtype=jnp.float32)
    # nn.Linear weight layout: (d_out, d_in)
    w_query = jax.random.uniform(k_q, (d_out, d_in), dtype=jnp.float32) - 0.5
    w_key = jax.random.uniform(k_k, (d_out, d_in), dtype=jnp.float32) - 0.5
    w_value = jax.random.uniform(k_v, (d_out, d_in), dtype=jnp.float32) - 0.5

    # Case 1: qkv_bias=False, exact f32 parity with the PyTorch module.
    out = jax.block_until_ready(self_attention_v2(x, w_query, w_key, w_value))
    ref = self_attention_v2_ref(x, w_query, w_key, w_value)
    assert out.shape == (seq, d_out)
    err1 = float(jnp.max(jnp.abs(out - ref)))
    assert jnp.allclose(out, ref, atol=2e-4, rtol=2e-4), f"mismatch (no bias): {err1}"

    # Case 2: qkv_bias=True, seq not a multiple of 8 (exercises padding + key mask).
    seq2 = 6
    x2 = jax.random.normal(k_x2, (seq2, d_in), dtype=jnp.float32)
    b_query = jax.random.uniform(k_bq, (d_out,), dtype=jnp.float32) - 0.5
    b_key = jax.random.uniform(k_bk, (d_out,), dtype=jnp.float32) - 0.5
    b_value = jax.random.uniform(k_bv, (d_out,), dtype=jnp.float32) - 0.5
    out2 = jax.block_until_ready(
        self_attention_v2(x2, w_query, w_key, w_value, b_query, b_key, b_value))
    ref2 = self_attention_v2_ref(x2, w_query, w_key, w_value, b_query, b_key, b_value)
    assert out2.shape == (seq2, d_out)
    err2 = float(jnp.max(jnp.abs(out2 - ref2)))
    assert jnp.allclose(out2, ref2, atol=2e-4, rtol=2e-4), f"mismatch (bias): {err2}"

    # Case 3: batched input (grid axis) + bf16 MXU operands (perf mode).
    B, seq3 = 2, 16
    x3 = jax.random.normal(k_x3, (B, seq3, d_in), dtype=jnp.float32)
    out3 = jax.block_until_ready(
        self_attention_v2(x3, w_query, w_key, w_value, b_query, b_key, b_value,
                          operand_dtype=jnp.bfloat16))
    ref3 = jnp.stack([
        self_attention_v2_mixed_ref(x3[b], w_query, w_key, w_value,
                                    b_query, b_key, b_value,
                                    operand_dtype=jnp.bfloat16)
        for b in range(B)])
    assert out3.shape == (B, seq3, d_out)
    err3 = float(jnp.max(jnp.abs(out3 - ref3)))
    assert jnp.allclose(out3, ref3, atol=2e-2, rtol=2e-2), f"mismatch (bf16 batched): {err3}"

    print("KERNEL_OK")
</pallas_src>

<mosaic_0001>
module attributes {stable_mosaic.version = 11 : i64} {
  func.func @_attn_kernel(%arg0: i32, %arg1: memref<1x8x128xf32, #tpu.memory_space<vmem>>, %arg2: memref<128x384xf32, #tpu.memory_space<vmem>>, %arg3: memref<1x8x128xf32, #tpu.memory_space<vmem>>) attributes {dimension_semantics = [#tpu.dimension_semantics<parallel>], iteration_bounds = array<i64: 1>, scalar_prefetch = 0 : i64, scratch_operands = 0 : i64, tpu.core_type = #tpu.core_type<tc>, window_params = [{transform_indices = @transform_0, window_bounds = array<i64: 1, 8, 128>}, {pipeline_mode = #tpu.pipeline_mode<synchronous>, transform_indices = @transform_1, window_bounds = array<i64: 128, 384>}, {transform_indices = @transform_2, window_bounds = array<i64: 1, 8, 128>}]} {
    %c0 = arith.constant 0 : index
    %c0_0 = arith.constant 0 : index
    %c0_1 = arith.constant 0 : index
    %0 = vector.load %arg1[%c0, %c0_0, %c0_1] : memref<1x8x128xf32, #tpu.memory_space<vmem>>, vector<1x8x128xf32>
    %1 = vector.shape_cast %0 : vector<1x8x128xf32> to vector<8x128xf32>
    %c0_2 = arith.constant 0 : index
    %c0_3 = arith.constant 0 : index
    %2 = vector.load %arg2[%c0_2, %c0_3] : memref<128x384xf32, #tpu.memory_space<vmem>>, vector<128x384xf32>
    %cst = arith.constant dense<0.000000e+00> : vector<8x384xf32>
    %3 = tpu.matmul %1, %2, %cst {dimension_numbers = #tpu.dot_dimension_numbers<[1], [0], [0], [1], [0, 0, 1, 1], [], []>, precision = #tpu.contract_precision<fp32>} : vector<8x128xf32>, vector<128x384xf32>, vector<8x384xf32> -> vector<8x384xf32>
    %4 = vector.extract_strided_slice %3 {offsets = [0, 0], sizes = [8, 128], strides = [1, 1]} : vector<8x384xf32> to vector<8x128xf32>
    %5 = vector.extract_strided_slice %3 {offsets = [0, 128], sizes = [8, 128], strides = [1, 1]} : vector<8x384xf32> to vector<8x128xf32>
    %6 = vector.extract_strided_slice %3 {offsets = [0, 256], sizes = [8, 128], strides = [1, 1]} : vector<8x384xf32> to vector<8x128xf32>
    %cst_4 = arith.constant dense<0.000000e+00> : vector<8x8xf32>
    %7 = tpu.matmul %4, %5, %cst_4 {dimension_numbers = #tpu.dot_dimension_numbers<[1], [1], [0], [0], [0, 0, 1, 0], [], []>, precision = #tpu.contract_precision<fp32>} : vector<8x128xf32>, vector<8x128xf32>, vector<8x8xf32> -> vector<8x8xf32>
    %cst_5 = arith.constant dense<0xFF800000> : vector<8xf32>
    %8 = vector.multi_reduction <maximumf>, %7, %cst_5 [1] : vector<8x8xf32> to vector<8xf32>
    %9 = vector.shape_cast %8 : vector<8xf32> to vector<8x1xf32>
    %10 = vector.broadcast %9 : vector<8x1xf32> to vector<8x8xf32>
    %11 = arith.subf %7, %10 : vector<8x8xf32>
    %12 = math.exp %11 : vector<8x8xf32>
    %cst_6 = arith.constant dense<0.000000e+00> : vector<8xf32>
    %13 = vector.multi_reduction <add>, %12, %cst_6 [1] : vector<8x8xf32> to vector<8xf32>
    %14 = vector.shape_cast %13 : vector<8xf32> to vector<8x1xf32>
    %cst_7 = arith.constant dense<0.000000e+00> : vector<8x128xf32>
    %15 = tpu.matmul %12, %6, %cst_7 {dimension_numbers = #tpu.dot_dimension_numbers<[1], [0], [0], [1], [0, 0, 1, 1], [], []>, precision = #tpu.contract_precision<fp32>} : vector<8x8xf32>, vector<8x128xf32>, vector<8x128xf32> -> vector<8x128xf32>
    %cst_8 = arith.constant 1.000000e+00 : f32
    %16 = vector.broadcast %cst_8 : f32 to vector<8x1xf32>
    %17 = arith.divf %16, %14 : vector<8x1xf32>
    %18 = vector.broadcast %17 : vector<8x1xf32> to vector<8x128xf32>
    %19 = arith.mulf %15, %18 : vector<8x128xf32>
    %c0_9 = arith.constant 0 : index
    %c0_10 = arith.constant 0 : index
    %c0_11 = arith.constant 0 : index
    %20 = vector.load %arg3[%c0_9, %c0_10, %c0_11] : memref<1x8x128xf32, #tpu.memory_space<vmem>>, vector<1x8x128xf32>
    %21 = vector.shape_cast %20 : vector<1x8x128xf32> to vector<8x128xf32>
    %22 = vector.shape_cast %19 : vector<8x128xf32> to vector<1x8x128xf32>
    tpu.vector_store %arg3[%c0_9, %c0_10, %c0_11], %22 {strides = array<i32>} : memref<1x8x128xf32, #tpu.memory_space<vmem>>, vector<1x8x128xf32>,
    return
  }
  func.func @transform_0(%arg0: i32) -> (i32, i32, i32) {
    %c0_i32 = arith.constant 0 : i32
    %c0_i32_0 = arith.constant 0 : i32
    %c0_i32_1 = arith.constant 0 : i32
    return %arg0, %c0_i32, %c0_i32_0 : i32, i32, i32
  }
  func.func @transform_1(%arg0: i32) -> (i32, i32) {
    %c0_i32 = arith.constant 0 : i32
    %c0_i32_0 = arith.constant 0 : i32
    %c0_i32_1 = arith.constant 0 : i32
    return %c0_i32, %c0_i32_0 : i32, i32
  }
  func.func @transform_2(%arg0: i32) -> (i32, i32, i32) {
    %c0_i32 = arith.constant 0 : i32
    %c0_i32_0 = arith.constant 0 : i32
    %c0_i32_1 = arith.constant 0 : i32
    return %arg0, %c0_i32, %c0_i32_0 : i32, i32, i32
  }
}

</mosaic_0001>

<bundles_post_ra>
// kernel: tpu_custom_call.1
= control target key start
LH: loop header
LB: loop body
LE: loop exit
PB: predicated region body
PF: predicated region fallthrough
CT: control target
= control target key end

     0   :  { %7 = vsyncpa [#allocation3], 0  ;;  %s4184_s0 = inlined_call_operand.hbm [shape: f32[1,8,128], index: 0, kind: input, shape index: {}]   ;;  %s4185_s1 = inlined_call_operand.hbm [shape: f32[128,384], index: 1, kind: input, shape index: {}]   ;;  %s4186_s2 = inlined_call_operand.hbm [shape: f32[1,8,128], index: 2, kind: output, shape index: {}]  }
   0x1   :  { %8 = vsyncpa [#allocation6], 0 }
   0x2   :  { %9 = vsyncpa [#allocation4], 0  ;;  %s3364_s9 = smov [#allocation2]   ;;  %s3365_s11 = smov [#allocation5]  }
   0x3   :  { %s16_s10 = sshll.u32 %s3364_s9, 4  ;;  %s25_s12 = sshll.u32 %s3365_s11, 4  ;;  %s17_s10 = int_to_ptr.vmem [resolvable:$true] %s16_s10  ;;  %s3387_s12 = int_to_ptr.vmem [resolvable:$true] %s25_s12 }
   0x4   :  { %s3292_s15 = scalar_lea.hbm %s4184_s0, 128 }
   0x5   :  { %p3293_p0 = scmp.ne.s32.totalorder %s4184_s0, %s3292_s15  ;;  %p3296_p1 = scmp.lt.u32.totalorder %s3292_s15, %s4184_s0 }
   0x7   :  { %p3298_p2 = pnand %p3296_p1, %p3293_p0 }
   0x9   :  { %3301 = shalt.err (!%p3298_p2)
}
   0xa   :  { %s3302_s20 = scalar_lea.vmem %s17_s10, 128  ;;  %p3307_p4 = scmp.lt.s32.totalorder %s17_s10, %s17_s10 }
   0xb   :  { %p3303_p3 = scmp.ne.s32.totalorder %s17_s10, %s3302_s20  ;;  %p3308_p5 = scmp.lt.s32.totalorder %s3302_s20, %s3302_s20 }
   0xd   :  { %p3309_p6 = por %p3308_p5, %p3307_p4 }
   0xf   :  { %p3310_p7 = pnand %p3309_p6, %p3303_p3 }
  0x11   :  { %3313 = shalt.err (!%p3310_p7)
}
  0x12   :  { %19 = dma.hbm_to_vmem [thread:$0]  %s4184_s0, 128, %s17_s10, [#allocation3]  }
  0x13   :  { %s3314_s25 = scalar_lea.hbm %s4185_s1, 6144 }
  0x14   :  { %p3315_p8 = scmp.ne.s32.totalorder %s4185_s1, %s3314_s25  ;;  %p3318_p9 = scmp.lt.u32.totalorder %s3314_s25, %s4185_s1 }
  0x16   :  { %p3320_p10 = pnand %p3318_p9, %p3315_p8 }
  0x18   :  { %3323 = shalt.err (!%p3320_p10)
}
  0x19   :  { %s3324_s30 = scalar_lea.vmem %s3387_s12, 6144  ;;  %p3329_p12 = scmp.lt.s32.totalorder %s3387_s12, %s3387_s12 }
  0x1a   :  { %p3325_p11 = scmp.ne.s32.totalorder %s3387_s12, %s3324_s30  ;;  %p3330_p13 = scmp.lt.s32.totalorder %s3324_s30, %s3324_s30 }
  0x1c   :  { %p3331_p0 = por %p3330_p13, %p3329_p12 }
  0x1e   :  { %p3332_p1 = pnand %p3331_p0, %p3325_p11 }
  0x20   :  { %3335 = shalt.err (!%p3332_p1)
}
  0x21   :  { %s3366_s0 = smov 384   ;;  %s3367_s3 = smov 24  }
  0x22   :  { %31 = dma.hbm_to_vmem [thread:$0]  %s4185_s1, 6144, %s3387_s12, [#allocation6], %s3366_s0, %s3366_s0, %s3367_s3  }
  0x23   :  { %3358 = dma.done.wait [#allocation3], 128  }
  0x24   :  { %3359 = vsyncadd [#allocation3], 4294967168 }
  0x25   :  { %3360 = dma.done.wait [#allocation6], 6144  }
  0x26   :  { %3361 = vsyncadd [#allocation6], 4294961152  ;;  %v4189_v0 = vmov 0.0   ;;  %v40_v1 = vld [vmem:[#allocation5 + $0x8] sm:$0xff]  ;;  %v43_v2 = vld [vmem:[#allocation5 + $0x20] sm:$0xff]  ;;  %vm3370_vm0 = vmmov 0  }
  0x27   :  { %183 = vmatprep.mubr.f32.mxu0 %v4189_v0  ;;  %v39_v3 = vld [vmem:[#allocation5] sm:$0xff]  ;;  %v87_v4 = vand.u32 4294901760, %v40_v1  ;;  %v91_v5 = vand.u32 4294901760, %v43_v2  ;;  %v42_v6 = vld [vmem:[#allocation5 + $0x18] sm:$0xff]  ;;  %v49_v9 = vld [vmem:[#allocation5 + $0x50] sm:$0xff]  ;;  %vm2029_vm1 = vcmask 64512  }
  0x28   :  { %v89_v7 = vand.u32 4294901760, %v39_v3  ;;  %v46_v8 = vld [vmem:[#allocation5 + $0x38] sm:$0xff]  ;;  %v93_v10 = vand.u32 4294901760, %v42_v6  ;;  %v99_v12 = vand.u32 4294901760, %v49_v9  ;;  %v45_v13 = vld [vmem:[#allocation5 + $0x30] sm:$0xff]  ;;  %v48_v14 = vld [vmem:[#allocation5 + $0x48] sm:$0xff] }
  0x29   :  { %v95_v11 = vand.u32 4294901760, %v46_v8  ;;  %v52_v15 = vld [vmem:[#allocation5 + $0x68] sm:$0xff]  ;;  %v3419_v16 = vpack.c.bf16 %v91_v5, %v87_v4  ;;  %v55_v17 = vld [vmem:[#allocation5 + $0x80] sm:$0xff]  ;;  %v54_v19 = vld [vmem:[#allocation5 + $0x78] sm:$0xff]  ;;  %v97_v23 = vand.u32 4294901760, %v45_v13  ;;  %v101_v24 = vand.u32 4294901760, %v48_v14 }
  0x2a   :  { %v51_v18 = vld [vmem:[#allocation5 + $0x60] sm:$0xff]  ;;  %v3421_v20 = vpack.c.bf16 %v93_v10, %v89_v7  ;;  %v58_v22 = vld [vmem:[#allocation5 + $0x98] sm:$0xff]  ;;  %v103_v25 = vand.u32 4294901760, %v52_v15  ;;  %v107_v26 = vand.u32 4294901760, %v55_v17  ;;  %v109_v28 = vand.u32 4294901760, %v54_v19  ;;  %v61_v29 = vld [vmem:[#allocation5 + $0xb0] sm:$0xff] }
  0x2b   :  { %4270 = vst [vmem:[#allocation11_spill] sm:$0xff] %v3419_v16  ;;  %v3423_v21 = vpack.c.bf16 %v99_v12, %v95_v11  ;;  %2905 = vmatprep.subr.bf16.mxu0 %v3419_v16  ;;  %v105_v27 = vand.u32 4294901760, %v51_v18  ;;  %v57_v30 = vld [vmem:[#allocation5 + $0x90] sm:$0xff]  ;;  %v3428_v31 = vpack.c.bf16 %v101_v24, %v97_v23  ;;  %v111_v32 = vand.u32 4294901760, %v58_v22  ;;  %v60_v33 = vld [vmem:[#allocation5 + $0xa8] sm:$0xff]  ;;  %v67_v35 = vld [vmem:[#allocation5 + $0xe0] sm:$0xff] }
  0x2c   :  { %4271 = vst [vmem:[#allocation12_spill] sm:$0xff] %v3421_v20  ;;  %2907 = vmatpush1.bf16.msra.mxu0 %v3421_v20  ;;  %v64_v34 = vld [vmem:[#allocation5 + $0xc8] sm:$0xff]  ;;  %v3430_v36 = vsub.f32 %v40_v1, %v87_v4  ;;  %v3432_v37 = vsub.f32 %v43_v2, %v91_v5  ;;  %v3434_v38 = vsub.f32 %v39_v3, %v89_v7  ;;  %v115_v43 = vand.u32 4294901760, %v61_v29  ;;  %v63_v48 = vld [vmem:[#allocation5 + $0xc0] sm:$0xff]  ;;  %v66_v49 = vld [vmem:[#allocation5 + $0xd8] sm:$0xff]  ;;  %s3371_s1 = smov [#allocation7]  }
  0x2d   :  { %4272 = vst [vmem:[#allocation13_spill] sm:$0xff] %v3423_v21  ;;  %2909 = vmatprep.subr.bf16.mxu0 %v3423_v21  ;;  %4273 = vst [vmem:[#allocation14_spill] sm:$0xff] %v3428_v31  ;;  %v3436_v39 = vpack.c.bf16 %v107_v26, %v103_v25  ;;  %v3438_v40 = vsub.f32 %v42_v6, %v93_v10  ;;  %v3440_v41 = vsub.f32 %v46_v8, %v95_v11  ;;  %v70_v54 = vld [vmem:[#allocation5 + $0xf8] sm:$0xff]  ;;  %v73_v55 = vld [vmem:[#allocation5 + $0x110] sm:$0xff]  ;;  %s2498_s6 = sshll.u32 %s3371_s1, 4  ;;  %s2499_s6 = int_to_ptr.vmem [resolvable:$true] %s2498_s6 }
  0x2e   :  { %v3442_v42 = vpack.c.bf16 %v109_v28, %v105_v27  ;;  %v113_v44 = vand.u32 4294901760, %v57_v30  ;;  %v117_v45 = vand.u32 4294901760, %v60_v33  ;;  %v119_v46 = vand.u32 4294901760, %v64_v34  ;;  %v69_v56 = vld [vmem:[#allocation5 + $0xf0] sm:$0xff]  ;;  %v72_v61 = vld [vmem:[#allocation5 + $0x108] sm:$0xff]  ;;  %v79_v63 = vld [vmem:[#allocation5 + $0x140] sm:$0xff]  ;;  %p3341_p3 = scmp.lt.s32.totalorder %s2499_s6, %s2499_s6 }
  0x2f   :  { %4274 = vst [vmem:[#allocation15_spill] sm:$0xff] %v3436_v39  ;;  %v123_v47 = vand.u32 4294901760, %v67_v35  ;;  %v3445_v50 = vsub.f32 %v49_v9, %v99_v12  ;;  %v3447_v51 = vsub.f32 %v45_v13, %v97_v23  ;;  %v3449_v52 = vsub.f32 %v48_v14, %v101_v24  ;;  %v76_v62 = vld [vmem:[#allocation5 + $0x128] sm:$0xff]  ;;  %v75_v9 = vld [vmem:[#allocation5 + $0x120] sm:$0xff]  ;;  %v78_v10 = vld [vmem:[#allocation5 + $0x138] sm:$0xff]  ;;  %s3336_s7 = scalar_lea.vmem %s2499_s6, 128 }
  0x30   :  { %4275 = vst [vmem:[#allocation16_spill] sm:$0xff] %v3442_v42  ;;  %2911 = vmatpush1.bf16.msra.mxu0 %v3428_v31  ;;  %v3452_v53 = vpack.c.bf16 %v115_v43, %v111_v32  ;;  %v3454_v57 = vsub.f32 %v52_v15, %v103_v25  ;;  %v3456_v58 = vsub.f32 %v55_v17, %v107_v26  ;;  %v121_v3 = vand.u32 4294901760, %v63_v48  ;;  %v38_v26 = vld [vmem:[#allocation2] sm:$0xff]  ;;  %p3337_p2 = scmp.ne.s32.totalorder %s2499_s6, %s3336_s7  ;;  %p3342_p4 = scmp.lt.s32.totalorder %s3336_s7, %s3336_s7 }
  0x31   :  { %2913 = vmatprep.subr.bf16.mxu0 %v3436_v39  ;;  %v3458_v59 = vsub.f32 %v51_v18, %v105_v27  ;;  %v3460_v60 = vsub.f32 %v54_v19, %v109_v28  ;;  %v3462_v1 = vsub.f32 %v58_v22, %v111_v32  ;;  %v3464_v2 = vsub.f32 %v61_v29, %v115_v43  ;;  %v82_v43 = vld [vmem:[#allocation5 + $0x158] sm:$0xff] }
  0x32   :  { %4276 = vst [vmem:[#allocation17_spill] sm:$0xff] %v3452_v53  ;;  %v125_v4 = vand.u32 4294901760, %v66_v49  ;;  %v3467_v5 = vpack.c.bf16 %v117_v45, %v113_v44  ;;  %v3469_v6 = vpack.c.bf16 %v123_v47, %v119_v46  ;;  %v127_v7 = vand.u32 4294901760, %v70_v54  ;;  %p3343_p5 = por %p3342_p4, %p3341_p3 }
  0x33   :  { %v131_v8 = vand.u32 4294901760, %v73_v55  ;;  %v129_v11 = vand.u32 4294901760, %v69_v56  ;;  %v133_v12 = vand.u32 4294901760, %v72_v61  ;;  %v135_v13 = vand.u32 4294901760, %v76_v62 }
  0x34   :  { %2915 = vmatpush1.bf16.msra.mxu0 %v3442_v42  ;;  %4277 = vst [vmem:[#allocation18_spill] sm:$0xff] %v3467_v5  ;;  %4278 = vst [vmem:[#allocation19_spill] sm:$0xff] %v3469_v6  ;;  %v139_v14 = vand.u32 4294901760, %v79_v63  ;;  %v3472_v15 = vsub.f32 %v57_v30, %v113_v44  ;;  %v3474_v17 = vsub.f32 %v60_v33, %v117_v45  ;;  %v137_v24 = vand.u32 4294901760, %v75_v9  ;;  %v85_v45 = vld [vmem:[#allocation5 + $0x170] sm:$0xff]  ;;  %p3344_p6 = pnand %p3343_p5, %p3337_p2 }
  0x35   :  { %2917 = vmatprep.subr.bf16.mxu0 %v3452_v53  ;;  %v3476_v18 = vsub.f32 %v64_v34, %v119_v46  ;;  %v3478_v19 = vsub.f32 %v67_v35, %v123_v47  ;;  %v3480_v22 = vpack.c.bf16 %v125_v4, %v121_v3  ;;  %v3482_v23 = vsub.f32 %v63_v48, %v121_v3 }
  0x36   :  { %v141_v25 = vand.u32 4294901760, %v78_v10  ;;  %v3485_v27 = vsub.f32 %v66_v49, %v125_v4  ;;  %v3487_v28 = vpack.c.bf16 %v131_v8, %v127_v7  ;;  %v3489_v29 = vsub.f32 %v70_v54, %v127_v7 }
  0x37   :  { %4279 = vst [vmem:[#allocation20_spill] sm:$0xff] %v3480_v22  ;;  %v3491_v30 = vsub.f32 %v73_v55, %v131_v8  ;;  %v3494_v32 = vpack.c.bf16 %v133_v12, %v129_v11  ;;  %v3496_v33 = vsub.f32 %v69_v56, %v129_v11  ;;  %v3498_v34 = vsub.f32 %v72_v61, %v133_v12  ;;  %v81_v56 = vld [vmem:[#allocation5 + $0x150] sm:$0xff]  ;;  %v3514_v61 = vld [vmem:[#allocation5 + $0x168] sm:$0xff] }
  0x38   :  { %2919 = vmatpush1.bf16.msra.mxu0 %v3467_v5  ;;  %4280 = vst [vmem:[#allocation21_spill] sm:$0xff] %v3487_v28  ;;  %v3500_v35 = vpack.c.bf16 %v139_v14, %v135_v13  ;;  %v3502_v44 = vsub.f32 %v76_v62, %v135_v13  ;;  %v4187_v46 = vand.u32 4294901760, %v3430_v36  ;;  %v4188_v47 = vand.u32 4294901760, %v3432_v37 }
  0x39   :  { %2921 = vmatprep.subr.bf16.mxu0 %v3469_v6  ;;  %4281 = vst [vmem:[#allocation22_spill] sm:$0xff] %v3494_v32  ;;  %v3506_v48 = vand.u32 4294901760, %v38_v26  ;;  %v3508_v49 = vsub.f32 %v79_v63, %v139_v14  ;;  %v3510_v54 = vpack.c.bf16 %v141_v25, %v137_v24  ;;  %v3512_v55 = vsub.f32 %v75_v9, %v137_v24 }
  0x3a   :  { %4282 = vst [vmem:[#allocation23_spill] sm:$0xff] %v3500_v35  ;;  %v4191_v3 = vand.u32 4294901760, %v3434_v38  ;;  %v3518_v62 = vsub.f32 %v78_v10, %v141_v25  ;;  %v143_v4 = vand.u32 4294901760, %v82_v43  ;;  %v198_v7 = vsub.f32 %v3430_v36, %v4187_v46 }
  0x3b   :  { %4283 = vst [vmem:[#allocation24_spill] sm:$0xff] %v3508_v49  ;;  %4284 = vst [vmem:[#allocation25_spill] sm:$0xff] %v3510_v54  ;;  %v210_v63 = vsub.f32 %v3432_v37, %v4188_v47  ;;  %v147_v8 = vand.u32 4294901760, %v85_v45  ;;  %v3528_v9 = vsub.f32 %v38_v26, %v3506_v48  ;;  %v4194_v11 = vand.u32 4294901760, %v3438_v40 }
  0x3c   :  { %4285 = vst [vmem:[#allocation26_spill] sm:$0xff] %v3512_v55  ;;  %2923 = vmatpush1.bf16.msra.mxu0 %v3480_v22  ;;  %4286 = vst [vmem:[#allocation27_spill] sm:$0xff] %v3518_v62  ;;  %v4199_v10 = vand.u32 4294901760, %v3440_v41  ;;  %v145_v12 = vand.u32 4294901760, %v81_v56  ;;  %v4200_v14 = vand.u32 4294901760, %v3445_v50  ;;  %v199_v25 = vand.u32 4294901760, %v198_v7 }
  0x3d   :  { %2925 = vmatprep.subr.bf16.mxu0 %v3487_v28  ;;  %4287 = vst [vmem:[#allocation28_spill] sm:$0xff] %v3528_v9  ;;  %v211_v46 = vand.u32 4294901760, %v210_v63  ;;  %v3536_v47 = vand.u32 4294901760, %v3528_v9  ;;  %v204_v26 = vsub.f32 %v3434_v38, %v4191_v3  ;;  %v216_v0 = vsub.f32 %v3438_v40, %v4194_v11 }
  0x3e   :  { %v222_v13 = vsub.f32 %v3440_v41, %v4199_v10  ;;  %v234_v7 = vsub.f32 %v3445_v50, %v4200_v14  ;;  %v4207_v63 = vand.u32 4294901760, %v3449_v52  ;;  %v3553_v24 = vpack.c.bf16 %v147_v8, %v143_v4 }
  0x3f   :  { %4288 = vst [vmem:[#allocation29_spill] sm:$0xff] %v3536_v47  ;;  %v3555_v3 = vsub.f32 %v82_v43, %v143_v4  ;;  %v4290_v28 = vand.u32 4294901760, %v3514_v61  ;;  %v4292_v10 = vand.u32 4294901760, %v3447_v51  ;;  %v2936_v43 = vpack.c.bf16 %v211_v46, %v199_v25 }
  0x40   :  { %2927 = vmatpush1.bf16.msra.mxu0 %v3494_v32  ;;  %4289 = vst [vmem:[#allocation30_spill] sm:$0xff] %v3553_v24  ;;  %v3557_v32 = vsub.f32 %v85_v45, %v147_v8  ;;  %v187_v45 = vsub.f32 %v3528_v9, %v3536_v47  ;;  %v205_v4 = vand.u32 4294901760, %v204_v26  ;;  %v223_v11 = vand.u32 4294901760, %v222_v13 }
  0x41   :  { %2929 = vmatprep.subr.bf16.mxu0 %v3500_v35  ;;  %v3562_v22 = vpack.c.bf16 %v4290_v28, %v145_v12  ;;  %v228_v14 = vsub.f32 %v3447_v51, %v4292_v10  ;;  %v240_v35 = vsub.f32 %v3449_v52, %v4207_v63  ;;  %v217_v28 = vand.u32 4294901760, %v216_v0 }
  0x42   :  { %v235_v5 = vand.u32 4294901760, %v234_v7  ;;  %v4216_v10 = vand.u32 4294901760, %v3460_v60  ;;  %v4293_v63 = vand.u32 4294901760, %v3454_v57  ;;  %v4294_v46 = vand.u32 4294901760, %v3456_v58 }
  0x43   :  { %4291 = vst [vmem:[#allocation31_spill] sm:$0xff] %v3562_v22  ;;  %v4221_v26 = vand.u32 4294901760, %v3462_v1  ;;  %v4226_v8 = vand.u32 4294901760, %v3464_v2  ;;  %v229_v47 = vand.u32 4294901760, %v228_v14  ;;  %v241_v0 = vand.u32 4294901760, %v240_v35 }
  0x44   :  { %2931 = vmatpush1.bf16.msra.mxu0 %v3510_v54  ;;  %v246_v6 = vsub.f32 %v3454_v57, %v4293_v63  ;;  %v258_v25 = vsub.f32 %v3456_v58, %v4294_v46  ;;  %v4295_v13 = vand.u32 4294901760, %v3458_v59  ;;  %v3591_v54 = vand.u32 4294901760, %v187_v45 }
  0x45   :  { %2933 = vmatprep.subr.bf16.mxu0 %v3553_v24  ;;  %v264_v24 = vsub.f32 %v3460_v60, %v4216_v10  ;;  %v270_v63 = vsub.f32 %v3462_v1, %v4221_v26  ;;  %v282_v46 = vsub.f32 %v3464_v2, %v4226_v8  ;;  %v3601_v14 = vsub.f32 %v81_v56, %v145_v12 }
  0x46   :  { %v252_v7 = vsub.f32 %v3458_v59, %v4295_v13  ;;  %4296 = vst [vmem:[#allocation32_spill] sm:$0xff] %v3591_v54  ;;  %v2938_v13 = vpack.c.bf16 %v217_v28, %v205_v4  ;;  %v4230_v53 = vand.u32 4294901760, %v3474_v17  ;;  %v4229_v45 = vand.u32 4294901760, %v3476_v18 }
  0x47   :  { %v2940_v10 = vpack.c.bf16 %v235_v5, %v223_v11  ;;  %v247_v42 = vand.u32 4294901760, %v246_v6  ;;  %v259_v39 = vand.u32 4294901760, %v258_v25  ;;  %v4228_v26 = vand.u32 4294901760, %v3478_v19 }
  0x48   :  { %2935 = vmatpush1.bf16.msra.mxu0 %v3562_v22  ;;  %v2942_v31 = vpack.c.bf16 %v241_v0, %v229_v47  ;;  %v253_v21 = vand.u32 4294901760, %v252_v7  ;;  %v265_v8 = vand.u32 4294901760, %v264_v24  ;;  %v4227_v35 = vand.u32 4294901760, %v3482_v23 }
  0x49   :  { %2937 = vmatprep.subr.bf16.mxu0 %v2936_v43  ;;  %v271_v56 = vand.u32 4294901760, %v270_v63  ;;  %v283_v12 = vand.u32 4294901760, %v282_v46  ;;  %v4297_v4 = vand.u32 4294901760, %v3472_v15  ;;  %v4231_v43 = vand.u32 4294901760, %v3485_v27 }
  0x4a   :  { %v288_v5 = vsub.f32 %v3474_v17, %v4230_v53  ;;  %v294_v6 = vsub.f32 %v3476_v18, %v4229_v45  ;;  %v306_v47 = vsub.f32 %v3478_v19, %v4228_v26  ;;  %v4298_v11 = vmov 0.0  }
  0x4b   :  { %189 = vmatmul.mubr.f32.vlgmr.msra.gmra.mrb[0].mxu0 %v3591_v54  ;;  %v276_v28 = vsub.f32 %v3472_v15, %v4297_v4  ;;  %v2944_v24 = vpack.c.bf16 %v259_v39, %v247_v42  ;;  %v300_v25 = vsub.f32 %v3482_v23, %v4227_v35  ;;  %v4233_v0 = vand.u32 4294901760, %v3489_v29 }
  0x4c   :  { %2939 = vmatpush1.bf16.msra.mxu0 %v2938_v13  ;;  %419 = vmatprep.mubr.f32.mxu0 %v4298_v11  ;;  %v4299_v63 = vand.u32 4294901760, %v3514_v61  ;;  %v312_v13 = vsub.f32 %v3485_v27, %v4231_v43  ;;  %v4232_v39 = vand.u32 4294901760, %v3498_v34  ;;  %v2946_v42 = vpack.c.bf16 %v265_v8, %v253_v21 }
  0x4d   :  { %2941 = vmatprep.subr.bf16.mxu0 %v2940_v10  ;;  %v2948_v4 = vpack.c.bf16 %v283_v12, %v271_v56  ;;  %v277_v35 = vand.u32 4294901760, %v276_v28  ;;  %v4239_v26 = vand.u32 4294901760, %v3502_v44  ;;  %v289_v45 = vand.u32 4294901760, %v288_v5 }
  0x4e   :  { %v3630_v46 = vsub.f32 %v3514_v61, %v4299_v63  ;;  %v295_v53 = vand.u32 4294901760, %v294_v6  ;;  %v307_v7 = vand.u32 4294901760, %v306_v47  ;;  %v353_v61 = vand.u32 4294901760, %v3508_v49 }
  0x4f   :  { %v301_v63 = vand.u32 4294901760, %v300_v25  ;;  %v318_v43 = vsub.f32 %v3489_v29, %v4233_v0  ;;  %v4300_v10 = vand.u32 4294901760, %v3491_v30  ;;  %v347_v8 = vand.u32 4294901760, %v3512_v55 }
  0x50   :  { %2943 = vmatpush1.bf16.msra.mxu0 %v2942_v31  ;;  %v313_v56 = vand.u32 4294901760, %v312_v13  ;;  %v4301_v31 = vand.u32 4294901760, %v3496_v33  ;;  %v336_v28 = vsub.f32 %v3498_v34, %v4232_v39  ;;  %v359_v5 = vand.u32 4294901760, %v3518_v62 }
  0x51   :  { %2945 = vmatprep.subr.bf16.mxu0 %v2944_v24  ;;  %v330_v21 = vsub.f32 %v3491_v30, %v4300_v10  ;;  %v342_v6 = vsub.f32 %v3502_v44, %v4239_v26  ;;  %v354_v47 = vsub.f32 %v3508_v49, %v353_v61  ;;  %v365_v24 = vand.u32 4294901760, %v3555_v3 }
  0x52   :  { %v324_v12 = vsub.f32 %v3496_v33, %v4301_v31  ;;  %v377_v25 = vand.u32 4294901760, %v3557_v32  ;;  %v2950_v13 = vpack.c.bf16 %v289_v45, %v277_v35  ;;  %v348_v10 = vsub.f32 %v3512_v55, %v347_v8 }
  0x53   :  { %v360_v31 = vsub.f32 %v3518_v62, %v359_v5  ;;  %v371_v39 = vand.u32 4294901760, %v3601_v14  ;;  %v2952_v0 = vpack.c.bf16 %v307_v7, %v295_v53  ;;  %v319_v22 = vand.u32 4294901760, %v318_v43 }
  0x54   :  { %2947 = vmatpush1.bf16.msra.mxu0 %v2946_v42  ;;  %v331_v54 = vand.u32 4294901760, %v330_v21  ;;  %v2954_v20 = vpack.c.bf16 %v313_v56, %v301_v63  ;;  %v325_v26 = vand.u32 4294901760, %v324_v12  ;;  %v337_v9 = vand.u32 4294901760, %v336_v28 }
  0x55   :  { %2949 = vmatprep.subr.bf16.mxu0 %v2948_v4  ;;  %v343_v16 = vand.u32 4294901760, %v342_v6  ;;  %v355_v49 = vand.u32 4294901760, %v354_v47  ;;  %v366_v11 = vsub.f32 %v3555_v3, %v365_v24  ;;  %v378_v42 = vsub.f32 %v3557_v32, %v377_v25 }
  0x56   :  { %v349_v35 = vand.u32 4294901760, %v348_v10  ;;  %v361_v45 = vand.u32 4294901760, %v360_v31  ;;  %v372_v62 = vsub.f32 %v3601_v14, %v371_v39  ;;  %v383_v55 = vand.u32 4294901760, %v3630_v46 }
  0x57   :  { %v2956_v53 = vpack.c.bf16 %v331_v54, %v319_v22  ;;  %v2958_v43 = vpack.c.bf16 %v337_v9, %v325_v26  ;;  %v2960_v7 = vpack.c.bf16 %v355_v49, %v343_v16  ;;  %v367_v4 = vand.u32 4294901760, %v366_v11 }
  0x58   :  { %2951 = vmatpush1.bf16.msra.mxu0 %v2950_v13  ;;  %v379_v63 = vand.u32 4294901760, %v378_v42  ;;  %v2962_v21 = vpack.c.bf16 %v361_v45, %v349_v35  ;;  %v373_v56 = vand.u32 4294901760, %v372_v62  ;;  %v384_v12 = vsub.f32 %v3630_v46, %v383_v55 }
  0x59   :  { %2953 = vmatprep.subr.bf16.mxu0 %v2952_v0  ;;  %v4302_v28 = vand.u32 4294901760, %v3430_v36  ;;  %v4303_v6 = vand.u32 4294901760, %v3432_v37  ;;  %v4304_v13 = vand.u32 4294901760, %v3434_v38  ;;  %v4305_v22 = vand.u32 4294901760, %v3438_v40 }
  0x5a   :  { %v4306_v16 = vand.u32 4294901760, %v3440_v41  ;;  %v4308_v62 = vand.u32 4294901760, %v3447_v51  ;;  %v4309_v9 = vand.u32 4294901760, %v3449_v52  ;;  %v4310_v11 = vand.u32 4294901760, %v3454_v57 }
  0x5b   :  { %v3671_v47 = vpack.c.bf16 %v4303_v6, %v4302_v28  ;;  %v3677_v54 = vpack.c.bf16 %v4305_v22, %v4304_v13  ;;  %v4311_v0 = vand.u32 4294901760, %v3456_v58  ;;  %v4312_v31 = vand.u32 4294901760, %v3458_v59 }
  0x5c   :  { %2955 = vmatpush1.bf16.msra.mxu0 %v2954_v20  ;;  %v4307_v20 = vand.u32 4294901760, %v3445_v50  ;;  %v3689_v26 = vpack.c.bf16 %v4309_v9, %v4308_v62  ;;  %v4313_v42 = vand.u32 4294901760, %v3460_v60  ;;  %v4314_v45 = vand.u32 4294901760, %v3462_v1 }
  0x5d   :  { %2957 = vmatprep.subr.bf16.mxu0 %v2956_v53  ;;  %v3695_v10 = vpack.c.bf16 %v4311_v0, %v4310_v11  ;;  %v4315_v53 = vand.u32 4294901760, %v3464_v2  ;;  %v4316_v6 = vand.u32 4294901760, %v3472_v15  ;;  %v4317_v13 = vand.u32 4294901760, %v3474_v17 }
  0x5e   :  { %v3683_v49 = vpack.c.bf16 %v4307_v20, %v4306_v16  ;;  %v3701_v35 = vpack.c.bf16 %v4313_v42, %v4312_v31  ;;  %v4318_v16 = vand.u32 4294901760, %v3476_v18  ;;  %v4319_v20 = vand.u32 4294901760, %v3478_v19 }
  0x5f   :  { %v3707_v28 = vpack.c.bf16 %v4315_v53, %v4314_v45  ;;  %v3713_v22 = vpack.c.bf16 %v4317_v13, %v4316_v6  ;;  %v4321_v9 = vand.u32 4294901760, %v3482_v23  ;;  %v4322_v11 = vand.u32 4294901760, %v3485_v27 }
  0x60   :  { %v3719_v62 = vpack.c.bf16 %v4319_v20, %v4318_v16  ;;  %v4324_v31 = vand.u32 4294901760, %v3489_v29  ;;  %v4325_v42 = vand.u32 4294901760, %v3491_v30  ;;  %v4326_v53 = vand.u32 4294901760, %v3496_v33  ;;  %2959 = vmatpush1.bf16.msra.mxu0 %v2958_v43  ;;  %v50_v43 = vld [vmem:[#allocation5 + $0x58] sm:$0xff] }
  0x61   :  { %v3725_v0 = vpack.c.bf16 %v4322_v11, %v4321_v9  ;;  %v4327_v6 = vand.u32 4294901760, %v3498_v34  ;;  %v4328_v16 = vand.u32 4294901760, %v3502_v44  ;;  %v3743_v9 = vpack.c.bf16 %v359_v5, %v347_v8  ;;  %2961 = vmatprep.subr.bf16.mxu0 %v2960_v7  ;;  %v3756_v5 = vld [vmem:[#allocation5 + $0x40] sm:$0xff]  ;;  %v53_v7 = vld [vmem:[#allocation5 + $0x70] sm:$0xff] }
  0x62   :  { %4320 = vst [vmem:[#allocation33_spill] sm:$0xff] %v3719_v62  ;;  %v3731_v45 = vpack.c.bf16 %v4325_v42, %v4324_v31  ;;  %v385_v62 = vand.u32 4294901760, %v384_v12  ;;  %v3745_v11 = vpack.c.bf16 %v377_v25, %v365_v24  ;;  %v2964_v31 = vpack.c.bf16 %v379_v63, %v367_v4  ;;  %v56_v4 = vld [vmem:[#allocation5 + $0x88] sm:$0xff]  ;;  %v62_v12 = vld [vmem:[#allocation5 + $0xb8] sm:$0xff] }
  0x63   :  { %4323 = vst [vmem:[#allocation34_spill] sm:$0xff] %v3725_v0  ;;  %v3737_v13 = vpack.c.bf16 %v4327_v6, %v4326_v53  ;;  %v3741_v20 = vpack.c.bf16 %v353_v61, %v4328_v16  ;;  %v3747_v0 = vpack.c.bf16 %v383_v55, %v371_v39  ;;  %v2968_v53 = vpack.c.bf16 %v3432_v37, %v3430_v36  ;;  %v41_v55 = vld [vmem:[#allocation5 + $0x10] sm:$0xff]  ;;  %v44_v39 = vld [vmem:[#allocation5 + $0x28] sm:$0xff] }
  0x64   :  { %2963 = vmatpush1.bf16.msra.mxu0 %v2962_v21  ;;  %v2966_v42 = vpack.c.bf16 %v385_v62, %v373_v56  ;;  %v2970_v61 = vpack.c.bf16 %v3438_v40, %v3434_v38  ;;  %v2972_v8 = vpack.c.bf16 %v3445_v50, %v3440_v41  ;;  %v2974_v24 = vpack.c.bf16 %v3449_v52, %v3447_v51  ;;  %v59_v56 = vld [vmem:[#allocation5 + $0xa0] sm:$0xff] }
  0x65   :  { %2965 = vmatprep.subr.bf16.mxu0 %v2964_v31  ;;  %v4329_v25 = vmov 0.0   ;;  %v943_v36 = vand.u32 4294901760, %v41_v55  ;;  %v946_v37 = vand.u32 4294901760, %v44_v39  ;;  %v949_v38 = vand.u32 4294901760, %v3756_v5 }
  0x66   :  { %v2976_v40 = vpack.c.bf16 %v3456_v58, %v3454_v57  ;;  %v4253_v41 = vmov 0.0|0.0   ;;  %v952_v50 = vand.u32 4294901760, %v50_v43  ;;  %2666 = vmatprep.mubr.msk.f32.mxu1 %vm3370_vm0, %v4329_v25  ;;  %v2978_v51 = vpack.c.bf16 %v3460_v60, %v3458_v59 }
  0x67   :  { %3096 = vmatprep.subr.bf16.mxu1 %v4253_v41  ;;  %v3765_v63 = vpack.c.bf16 %v946_v37, %v943_v36  ;;  %v955_v57 = vand.u32 4294901760, %v53_v7  ;;  %v958_v58 = vand.u32 4294901760, %v56_v4  ;;  %v2980_v21 = vpack.c.bf16 %v3464_v2, %v3462_v1  ;;  %v3785_v1 = vld [vmem:[#allocation5 + $0xd0] sm:$0xff]  ;;  %v3787_v2 = vld [vmem:[#allocation5 + $0xe8] sm:$0xff] }
  0x68   :  { %2967 = vmatpush1.bf16.msra.mxu0 %v2966_v42  ;;  %v3772_v52 = vpack.c.bf16 %v952_v50, %v949_v38  ;;  %v2982_v62 = vpack.c.bf16 %v3474_v17, %v3472_v15  ;;  %v961_v60 = vand.u32 4294901760, %v59_v56  ;;  %v964_v6 = vand.u32 4294901760, %v62_v12 }
  0x69   :  { %2969 = vmatprep.subr.bf16.mxu0 %v2968_v53  ;;  %3098 = vmatpush3.bf16.msra.mxu1 %v3765_v63  ;;  %v3780_v59 = vpack.c.bf16 %v958_v58, %v955_v57  ;;  %v2984_v16 = vpack.c.bf16 %v3478_v19, %v3476_v18  ;;  %v2986_v15 = vpack.c.bf16 %v3485_v27, %v3482_v23  ;;  %v967_v31 = vand.u32 4294901760, %v3785_v1  ;;  %v3799_v19 = vld [vmem:[#allocation5 + $0x100] sm:$0xff]  ;;  %v3801_v53 = vld [vmem:[#allocation5 + $0x118] sm:$0xff] }
  0x6a   :  { %3099 = vmatprep.subr.bf16.mxu1 %v4253_v41  ;;  %v3792_v17 = vpack.c.bf16 %v964_v6, %v961_v60  ;;  %v970_v42 = vand.u32 4294901760, %v3787_v2  ;;  %v2988_v18 = vpack.c.bf16 %v3491_v30, %v3489_v29  ;;  %v2990_v23 = vpack.c.bf16 %v3498_v34, %v3496_v33  ;;  %v3821_v33 = vld [vmem:[#allocation5 + $0x130] sm:$0xff]  ;;  %v3823_v34 = vld [vmem:[#allocation5 + $0x148] sm:$0xff] }
  0x6b   :  { %421 = vmatmul.mubr.f32.vlgmr.msra.gmra.mrb[0].mxu0 %v3506_v48  ;;  %v4250_v29 = vand.u32 4294901760, %v3799_v19  ;;  %v4249_v30 = vand.u32 4294901760, %v3801_v53 }
  0x6c   :  { %2971 = vmatpush1.bf16.msra.mxu0 %v2970_v61  ;;  %555 = vmatprep.mubr.f32.mxu0 %v4329_v25  ;;  %4330 = vst [vmem:[#allocation35_spill] sm:$0xff] %v3792_v17  ;;  %v3810_v27 = vpack.c.bf16 %v970_v42, %v967_v31  ;;  %v4332_v61 = vld [vmem:[#allocation24_spill] sm:$0xff] }
  0x6d   :  { %2973 = vmatprep.subr.bf16.mxu0 %v2972_v8  ;;  %3101 = vmatpush3.bf16.msra.mxu1 %v3772_v52  ;;  %v2992_v8 = vpack.c.bf16 %v4332_v61, %v3502_v44  ;;  %v3832_v44 = vsub.f32 %v50_v43, %v952_v50  ;;  %v3851_v43 = vsub.f32 %v59_v56, %v961_v60 }
  0x6e   :  { %3102 = vmatprep.subr.bf16.mxu1 %v4253_v41  ;;  %4331 = vst [vmem:[#allocation36_spill] sm:$0xff] %v3810_v27 }
  0x70   :  { %2975 = vmatpush1.bf16.msra.mxu0 %v2974_v24  ;;  %v3816_v24 = vsub.f32 %v41_v55, %v943_v36  ;;  %v3834_v55 = vsub.f32 %v53_v7, %v955_v57  ;;  %v3843_v36 = vpack.c.bf16 %v4249_v30, %v4250_v29  ;;  %v4343_v29 = vld [vmem:[#allocation28_spill] sm:$0xff] }
  0x71   :  { %2977 = vmatprep.subr.bf16.mxu0 %v2976_v40  ;;  %3104 = vmatpush3.bf16.msra.mxu1 %v3780_v59  ;;  %v3818_v40 = vsub.f32 %v44_v39, %v946_v37  ;;  %v3836_v39 = vsub.f32 %v56_v4, %v958_v58  ;;  %v3849_v37 = vld [vmem:[#allocation5 + $0x178] sm:$0xff]  ;;  %v2998_v4 = vpack.c.bf16 %v3630_v46, %v3601_v14 }
  0x72   :  { %3105 = vmatprep.subr.bf16.mxu1 %v4253_v41  ;;  %4335 = vst [vmem:[#allocation24_spill] sm:$0xff] %v3843_v36  ;;  %v1036_v50 = vand.u32 4294901760, %v3816_v24  ;;  %v4251_v58 = vand.u32 4294901760, %v3849_v37  ;;  %v1064_v60 = vand.u32 4294901760, %v3834_v55 }
  0x73   :  { %v1043_v7 = vand.u32 4294901760, %v3818_v40  ;;  %v1071_v14 = vand.u32 4294901760, %v3836_v39 }
  0x74   :  { %2979 = vmatpush1.bf16.msra.mxu0 %v2978_v51  ;;  %v4333_v51 = vld [vmem:[#allocation26_spill] sm:$0xff]  ;;  %v1037_v46 = vsub.f32 %v3816_v24, %v1036_v50 }
  0x75   :  { %2981 = vmatprep.subr.bf16.mxu0 %v2980_v21  ;;  %3107 = vmatpush3.bf16.msra.mxu1 %v3792_v17  ;;  %v4334_v21 = vld [vmem:[#allocation27_spill] sm:$0xff] }
  0x76   :  { %3108 = vmatprep.subr.bf16.mxu1 %v4253_v41  ;;  %v4364_v17 = vld [vmem:[#allocation23_spill] sm:$0xff] }
  0x78   :  { %2983 = vmatpush1.bf16.msra.mxu0 %v2982_v62  ;;  %v2994_v62 = vpack.c.bf16 %v4334_v21, %v4333_v51  ;;  %v3882_v21 = vpack.c.bf16 %v1071_v14, %v1064_v60 }
  0x79   :  { %2985 = vmatprep.subr.bf16.mxu0 %v2984_v16  ;;  %v2996_v16 = vpack.c.bf16 %v3557_v32, %v3555_v3  ;;  %3110 = vmatpush3.bf16.msra.mxu1 %v3810_v27  ;;  %v4248_v32 = vand.u32 4294901760, %v3821_v33  ;;  %v4247_v3 = vand.u32 4294901760, %v3823_v34 }
  0x7a   :  { %3111 = vmatprep.subr.bf16.mxu1 %v4253_v41  ;;  %4339 = vst [vmem:[#allocation38_spill] sm:$0xff] %v3882_v21  ;;  %v4346_v21 = vmov 0.0|0.0  }
  0x7b   :  { %v3868_v56 = vpack.c.bf16 %v4247_v3, %v4248_v32  ;;  %v4341_v3 = vld [vmem:[#allocation11_spill] sm:$0xff] }
  0x7c   :  { %2987 = vmatpush1.bf16.msra.mxu0 %v2986_v15  ;;  %v3830_v15 = vsub.f32 %v3756_v5, %v949_v38  ;;  %v3847_v5 = vld [vmem:[#allocation5 + $0x160] sm:$0xff]  ;;  %v3853_v38 = vsub.f32 %v62_v12, %v964_v6  ;;  %v1057_v12 = vand.u32 4294901760, %v3832_v44  ;;  %v1044_v6 = vsub.f32 %v3818_v40, %v1043_v7 }
  0x7d   :  { %2989 = vmatprep.subr.bf16.mxu0 %v2988_v18  ;;  %v4252_v57 = vand.u32 4294901760, %v3847_v5  ;;  %3113 = vmatpush3.bf16.msra.mxu1 %v3843_v36  ;;  %4336 = vst [vmem:[#allocation26_spill] sm:$0xff] %v3868_v56 }
  0x7e   :  { %v1050_v18 = vand.u32 4294901760, %v3830_v15  ;;  %3114 = vmatprep.subr.bf16.mxu1 %v4253_v41  ;;  %v1085_v61 = vand.u32 4294901760, %v3853_v38  ;;  %v1045_v32 = vand.u32 4294901760, %v1044_v6  ;;  %v1058_v30 = vsub.f32 %v3832_v44, %v1057_v12  ;;  %v4345_v6 = vld [vmem:[#allocation13_spill] sm:$0xff] }
  0x80   :  { %2991 = vmatpush1.bf16.msra.mxu0 %v2990_v23  ;;  %v1078_v23 = vand.u32 4294901760, %v3851_v43  ;;  %v3880_v51 = vpack.c.bf16 %v1057_v12, %v1050_v18 }
  0x81   :  { %2993 = vmatprep.subr.bf16.mxu0 %v2992_v8  ;;  %v3878_v8 = vpack.c.bf16 %v1043_v7, %v1036_v50  ;;  %3116 = vmatpush3.bf16.msra.mxu1 %v3868_v56  ;;  %v3894_v50 = vpack.c.bf16 %v4251_v58, %v4252_v57  ;;  %v1038_v7 = vand.u32 4294901760, %v1037_v46  ;;  %v3908_v58 = vsub.f32 %v3787_v2, %v970_v42  ;;  %v4348_v2 = vld [vmem:[#allocation14_spill] sm:$0xff] }
  0x82   :  { %4338 = vst [vmem:[#allocation37_spill] sm:$0xff] %v3880_v51  ;;  %3117 = vmatprep.subr.bf16.mxu1 %v4253_v41  ;;  %v1059_v57 = vand.u32 4294901760, %v1058_v30  ;;  %v1065_v41 = vsub.f32 %v3834_v55, %v1064_v60  ;;  %v4349_v42 = vand.u32 4294901760, %v3801_v53  ;;  %v1079_v30 = vsub.f32 %v3851_v43, %v1078_v23 }
  0x83   :  { %4337 = vst [vmem:[#allocation27_spill] sm:$0xff] %v3878_v8  ;;  %4342 = vst [vmem:[#allocation11_spill] sm:$0xff] %v3894_v50  ;;  %v3121_v12 = vpack.c.bf16 %v1045_v32, %v1038_v7  ;;  %v4350_v32 = vld [vmem:[#allocation32_spill] sm:$0xff]  ;;  %v1086_v60 = vsub.f32 %v3853_v38, %v1085_v61  ;;  %v4351_v7 = vld [vmem:[#allocation15_spill] sm:$0xff]  ;;  %v4257_v8 = vand.u32 4294901760, %v3908_v58 }
  0x84   :  { %2995 = vmatpush1.bf16.msra.mxu0 %v2994_v62  ;;  %v3884_v62 = vpack.c.bf16 %v1085_v61, %v1078_v23  ;;  %v4353_v61 = vld [vmem:[#allocation16_spill] sm:$0xff] }
  0x85   :  { %2997 = vmatprep.subr.bf16.mxu0 %v2996_v16  ;;  %v1051_v16 = vsub.f32 %v3830_v15, %v1050_v18  ;;  %v3903_v18 = vsub.f32 %v3785_v1, %v967_v31  ;;  %3119 = vmatpush3.bf16.msra.mxu1 %v3894_v50  ;;  %v4347_v1 = vand.u32 4294901760, %v3799_v19 }
  0x86   :  { %4340 = vst [vmem:[#allocation39_spill] sm:$0xff] %v3884_v62  ;;  %v1072_v62 = vsub.f32 %v3836_v39, %v1071_v14  ;;  %3120 = vmatprep.subr.bf16.mxu1 %v4346_v21 }
  0x87   :  { %v1052_v46 = vand.u32 4294901760, %v1051_v16  ;;  %v3918_v31 = vsub.f32 %v3799_v19, %v4347_v1  ;;  %v3924_v16 = vsub.f32 %v3801_v53, %v4349_v42  ;;  %v4258_v14 = vand.u32 4294901760, %v3903_v18 }
  0x88   :  { %2999 = vmatpush1.bf16.msra.mxu0 %v2998_v4  ;;  %v4344_v4 = vld [vmem:[#allocation12_spill] sm:$0xff]  ;;  %2667 = vmatmul.mubr.f32.vlgmr.msra.gmra.mrb[0].mxu1 %v4350_v32  ;;  %v1066_v1 = vand.u32 4294901760, %v1065_v41  ;;  %v1073_v51 = vand.u32 4294901760, %v1072_v62  ;;  %v4352_v53 = vand.u32 4294901760, %v3821_v33  ;;  %v4354_v42 = vand.u32 4294901760, %v3823_v34 }
  0x89   :  { %3001 = vmatprep.subr.bf16.mxu0 %v4341_v3  ;;  %3122 = vmatpush3.bf16.msra.mxu1 %v3121_v12  ;;  %v3124_v19 = vpack.c.bf16 %v1059_v57, %v1052_v46  ;;  %v1080_v41 = vand.u32 4294901760, %v1079_v30  ;;  %v1087_v62 = vand.u32 4294901760, %v1086_v60  ;;  %v4263_v46 = vand.u32 4294901760, %v3918_v31  ;;  %v4355_v12 = vld [vmem:[#allocation17_spill] sm:$0xff]  ;;  %v4357_v60 = vld [vmem:[#allocation18_spill] sm:$0xff] }
  0x8a   :  { %3123 = vmatprep.subr.bf16.mxu1 %v4346_v21  ;;  %2701 = vmatprep.mubr.msk.f32.mxu1 %vm3370_vm0, %v4329_v25  ;;  %v3938_v23 = vsub.f32 %v3821_v33, %v4352_v53  ;;  %v3944_v57 = vsub.f32 %v3823_v34, %v4354_v42  ;;  %v3127_v32 = vpack.c.bf16 %v1073_v51, %v1066_v1  ;;  %v4356_v34 = vand.u32 4294901760, %v3847_v5 }
  0x8b   :  { %558 = vmatmul.mubr.f32.vlgmr.msra.gmra.mrb[0].mxu0 %v4343_v29  ;;  %v1093_v33 = vsub.f32 %v3903_v18, %v4258_v14  ;;  %v1100_v53 = vsub.f32 %v3908_v58, %v4257_v8  ;;  %v4358_v51 = vand.u32 4294901760, %v3849_v37  ;;  %v3130_v1 = vpack.c.bf16 %v1087_v62, %v1080_v41  ;;  %v4359_v14 = vld [vmem:[#allocation19_spill] sm:$0xff] }
  0x8c   :  { %3003 = vmatpush1.bf16.msra.mxu0 %v4344_v4  ;;  %660 = vmatprep.mubr.f32.mxu0 %v4329_v25  ;;  %v3959_v30 = vsub.f32 %v3847_v5, %v4356_v34  ;;  %v1107_v42 = vsub.f32 %v3918_v31, %v4263_v46  ;;  %v4268_v8 = vand.u32 4294901760, %v3938_v23  ;;  %v4360_v34 = vand.u32 4294901760, %v3924_v16 }
  0x8d   :  { %3005 = vmatprep.subr.bf16.mxu0 %v4345_v6  ;;  %3125 = vmatpush3.bf16.msra.mxu1 %v3124_v19  ;;  %v3965_v19 = vsub.f32 %v3849_v37, %v4358_v51  ;;  %v1094_v50 = vand.u32 4294901760, %v1093_v33  ;;  %v1101_v5 = vand.u32 4294901760, %v1100_v53  ;;  %v4269_v36 = vand.u32 4294901760, %v3944_v57  ;;  %v4361_v37 = vld [vmem:[#allocation20_spill] sm:$0xff] }
  0x8e   :  { %3126 = vmatprep.subr.bf16.mxu1 %v4346_v21  ;;  %v1114_v56 = vsub.f32 %v3924_v16, %v4360_v34  ;;  %v1108_v41 = vand.u32 4294901760, %v1107_v42  ;;  %v1121_v62 = vsub.f32 %v3938_v23, %v4268_v8  ;;  %v4363_v42 = vld [vmem:[#allocation22_spill] sm:$0xff] }
  0x8f   :  { %v3133_v33 = vpack.c.bf16 %v1101_v5, %v1094_v50  ;;  %v1128_v34 = vsub.f32 %v3944_v57, %v4269_v36  ;;  %v1141_v46 = vand.u32 4294901760, %v3965_v19  ;;  %v4366_v5 = vld [vmem:[#allocation25_spill] sm:$0xff]  ;;  %v4367_v36 = vld [vmem:[#allocation30_spill] sm:$0xff] }
  0x90   :  { %3007 = vmatpush1.bf16.msra.mxu0 %v4348_v2  ;;  %v1115_v53 = vand.u32 4294901760, %v1114_v56  ;;  %v1122_v27 = vand.u32 4294901760, %v1121_v62 }
  0x91   :  { %3009 = vmatprep.subr.bf16.mxu0 %v4351_v7  ;;  %3128 = vmatpush3.bf16.msra.mxu1 %v3127_v32  ;;  %v4362_v32 = vld [vmem:[#allocation21_spill] sm:$0xff]  ;;  %v1129_v51 = vand.u32 4294901760, %v1128_v34  ;;  %v1142_v50 = vsub.f32 %v3965_v19, %v1141_v46 }
  0x92   :  { %3129 = vmatprep.subr.bf16.mxu1 %v4346_v21  ;;  %v3136_v8 = vpack.c.bf16 %v1115_v53, %v1108_v41  ;;  %v4368_v41 = vld [vmem:[#allocation31_spill] sm:$0xff]  ;;  %v4369_v34 = vld [vmem:[#allocation29_spill] sm:$0xff] }
  0x93   :  { %v3139_v62 = vpack.c.bf16 %v1129_v51, %v1122_v27  ;;  %v3145_v27 = vpack.c.bf16 %v3818_v40, %v3816_v24  ;;  %v4379_v24 = vld [vmem:[#allocation37_spill] sm:$0xff]  ;;  %v4380_v40 = vld [vmem:[#allocation38_spill] sm:$0xff] }
  0x94   :  { %3011 = vmatpush1.bf16.msra.mxu0 %v4353_v61 }
  0x95   :  { %3013 = vmatprep.subr.bf16.mxu0 %v4355_v12  ;;  %3131 = vmatpush3.bf16.msra.mxu1 %v3130_v1  ;;  %v4365_v1 = vand.u32 4294901760, %v3959_v30 }
  0x96   :  { %3132 = vmatprep.subr.bf16.mxu1 %v4346_v21 }
  0x97   :  { %v1135_v56 = vsub.f32 %v3959_v30, %v4365_v1 }
  0x98   :  { %3015 = vmatpush1.bf16.msra.mxu0 %v4357_v60 }
  0x99   :  { %3017 = vmatprep.subr.bf16.mxu0 %v4359_v14  ;;  %3134 = vmatpush3.bf16.msra.mxu1 %v3133_v33  ;;  %v1143_v33 = vand.u32 4294901760, %v1142_v50 }
  0x9a   :  { %3135 = vmatprep.subr.bf16.mxu1 %v4346_v21 }
  0x9c   :  { %3019 = vmatpush1.bf16.msra.mxu0 %v4361_v37 }
  0x9d   :  { %3021 = vmatprep.subr.bf16.mxu0 %v4362_v32  ;;  %3137 = vmatpush3.bf16.msra.mxu1 %v3136_v8  ;;  %v4387_v8 = vand.u32 4294901760, %v3944_v57 }
  0x9e   :  { %3138 = vmatprep.subr.bf16.mxu1 %v4346_v21 }
  0xa0   :  { %3023 = vmatpush1.bf16.msra.mxu0 %v4363_v42 }
  0xa1   :  { %3025 = vmatprep.subr.bf16.mxu0 %v4364_v17  ;;  %v1136_v17 = vand.u32 4294901760, %v1135_v56  ;;  %3140 = vmatpush3.bf16.msra.mxu1 %v3139_v62 }
  0xa2   :  { %3141 = vmatprep.subr.bf16.mxu1 %v4346_v21 }
  0xa3   :  { %v3142_v53 = vpack.c.bf16 %v1143_v33, %v1136_v17  ;;  %v4377_v17 = vld [vmem:[#allocation11_spill] sm:$0xff] }
  0xa4   :  { %3027 = vmatpush1.bf16.msra.mxu0 %v4366_v5 }
  0xa5   :  { %3029 = vmatprep.subr.bf16.mxu0 %v4367_v36  ;;  %3143 = vmatpush3.bf16.msra.mxu1 %v3142_v53 }
  0xa6   :  { %3144 = vmatprep.subr.bf16.mxu1 %v4346_v21 }
  0xa8   :  { %3031 = vmatpush1.bf16.msra.mxu0 %v4368_v41  ;;  %2702 = vmatmul.mubr.f32.vlgmr.msra.gmra.mrb[0].mxu1 %v3506_v48 }
  0xa9   :  { %3033 = vmatprep.subr.bf16.mxu0 %v3671_v47  ;;  %3146 = vmatpush3.bf16.msra.mxu1 %v3145_v27  ;;  %v3148_v47 = vpack.c.bf16 %v3832_v44, %v3830_v15  ;;  %v4381_v15 = vld [vmem:[#allocation39_spill] sm:$0xff]  ;;  %v4382_v44 = vand.u32 4294901760, %v3903_v18 }
  0xaa   :  { %3147 = vmatprep.subr.bf16.mxu1 %v4346_v21  ;;  %2736 = vmatprep.mubr.msk.f32.mxu1 %vm3370_vm0, %v4329_v25 }
  0xab   :  { %664 = vmatmul.mubr.f32.vlgmr.msra.gmra.mrb[0].mxu0 %v4369_v34 }
  0xac   :  { %3035 = vmatpush1.bf16.msra.mxu0 %v3677_v54  ;;  %830 = vmatprep.mubr.f32.mxu0 %v4329_v25  ;;  %v3151_v54 = vpack.c.bf16 %v3836_v39, %v3834_v55  ;;  %v4383_v55 = vand.u32 4294901760, %v3908_v58 }
  0xad   :  { %3037 = vmatprep.subr.bf16.mxu0 %v3683_v49  ;;  %3149 = vmatpush3.bf16.msra.mxu1 %v3148_v47  ;;  %v4370_v49 = vld [vmem:[#allocation33_spill] sm:$0xff] }
  0xae   :  { %3150 = vmatprep.subr.bf16.mxu1 %v4346_v21  ;;  %v3205_v39 = vpack.c.bf16 %v4383_v55, %v4382_v44 }
  0xb0   :  { %3039 = vmatpush1.bf16.msra.mxu0 %v3689_v26  ;;  %v3154_v26 = vpack.c.bf16 %v3853_v38, %v3851_v43  ;;  %v4386_v38 = vand.u32 4294901760, %v3938_v23 }
  0xb1   :  { %3041 = vmatprep.subr.bf16.mxu0 %v3695_v10  ;;  %3152 = vmatpush3.bf16.msra.mxu1 %v3151_v54  ;;  %v4371_v10 = vld [vmem:[#allocation34_spill] sm:$0xff] }
  0xb2   :  { %3153 = vmatprep.subr.bf16.mxu1 %v4346_v21 }
  0xb4   :  { %3043 = vmatpush1.bf16.msra.mxu0 %v3701_v35  ;;  %v3157_v35 = vpack.c.bf16 %v3908_v58, %v3903_v18  ;;  %v4388_v58 = vmov %v4365_v1 }
  0xb5   :  { %3045 = vmatprep.subr.bf16.mxu0 %v3707_v28  ;;  %3155 = vmatpush3.bf16.msra.mxu1 %v3154_v26  ;;  %v3160_v28 = vpack.c.bf16 %v3924_v16, %v3918_v31  ;;  %v3214_v18 = vpack.c.bf16 %v1141_v46, %v4388_v58 }
  0xb6   :  { %3156 = vmatprep.subr.bf16.mxu1 %v4346_v21 }
  0xb8   :  { %3047 = vmatpush1.bf16.msra.mxu0 %v3713_v22  ;;  %v3163_v22 = vpack.c.bf16 %v3944_v57, %v3938_v23 }
  0xb9   :  { %3049 = vmatprep.subr.bf16.mxu0 %v4370_v49  ;;  %3158 = vmatpush3.bf16.msra.mxu1 %v3157_v35 }
  0xba   :  { %3159 = vmatprep.subr.bf16.mxu1 %v4346_v21 }
  0xbc   :  { %3051 = vmatpush1.bf16.msra.mxu0 %v4371_v10 }
  0xbd   :  { %3053 = vmatprep.subr.bf16.mxu0 %v3731_v45  ;;  %3161 = vmatpush3.bf16.msra.mxu1 %v3160_v28  ;;  %v3166_v45 = vpack.c.bf16 %v3965_v19, %v3959_v30 }
  0xbe   :  { %3162 = vmatprep.subr.bf16.mxu1 %v4346_v21 }
  0xc0   :  { %3055 = vmatpush1.bf16.msra.mxu0 %v3737_v13  ;;  %v4373_v13 = vld [vmem:[#allocation23_spill] sm:$0xff] }
  0xc1   :  { %3057 = vmatprep.subr.bf16.mxu0 %v3741_v20  ;;  %3164 = vmatpush3.bf16.msra.mxu1 %v3163_v22  ;;  %v4374_v20 = vld [vmem:[#allocation36_spill] sm:$0xff] }
  0xc2   :  { %3165 = vmatprep.subr.bf16.mxu1 %v4346_v21 }
  0xc4   :  { %3059 = vmatpush1.bf16.msra.mxu0 %v3743_v9  ;;  %v4375_v9 = vld [vmem:[#allocation24_spill] sm:$0xff] }
  0xc5   :  { %3061 = vmatprep.subr.bf16.mxu0 %v3745_v11  ;;  %3167 = vmatpush3.bf16.msra.mxu1 %v3166_v45  ;;  %v4376_v11 = vld [vmem:[#allocation26_spill] sm:$0xff] }
  0xc6   :  { %3168 = vmatprep.subr.bf16.mxu1 %v4346_v21 }
  0xc8   :  { %3063 = vmatpush1.bf16.msra.mxu0 %v3747_v0  ;;  %2737 = vmatmul.mubr.f32.vlgmr.msra.gmra.mrb[0].mxu1 %v4343_v29  ;;  %v4372_v0 = vld [vmem:[#allocation35_spill] sm:$0xff] }
  0xc9   :  { %3065 = vmatprep.subr.bf16.mxu0 %v4341_v3  ;;  %3170 = vmatpush3.bf16.msra.mxu1 %v3765_v63  ;;  %v4378_v29 = vld [vmem:[#allocation27_spill] sm:$0xff]  ;;  %v4385_v3 = vand.u32 4294901760, %v3924_v16 }
  0xca   :  { %3171 = vmatprep.subr.bf16.mxu1 %v4346_v21  ;;  %2771 = vmatprep.mubr.msk.f32.mxu1 %vm3370_vm0, %v4329_v25 }
  0xcb   :  { %832 = vmatmul.mubr.f32.vlgmr.msra.gmra.mrb[0].mxu0 %v3506_v48 }
  0xcc   :  { %3067 = vmatpush1.bf16.msra.mxu0 %v4344_v4  ;;  %934 = vmatprep.mubr.f32.mxu0 %v4329_v25  ;;  %v3211_v4 = vpack.c.bf16 %v4387_v8, %v4386_v38 }
  0xcd   :  { %3069 = vmatprep.subr.bf16.mxu0 %v4345_v6  ;;  %3173 = vmatpush3.bf16.msra.mxu1 %v3772_v52 }
  0xce   :  { %3174 = vmatprep.subr.bf16.mxu1 %v4346_v21 }
  0xd0   :  { %3071 = vmatpush1.bf16.msra.mxu0 %v4348_v2 }
  0xd1   :  { %3073 = vmatprep.subr.bf16.mxu0 %v4351_v7  ;;  %3176 = vmatpush3.bf16.msra.mxu1 %v3780_v59 }
  0xd2   :  { %3177 = vmatprep.subr.bf16.mxu1 %v4346_v21 }
  0xd4   :  { %3075 = vmatpush1.bf16.msra.mxu0 %v4353_v61 }
  0xd5   :  { %3077 = vmatprep.subr.bf16.mxu0 %v4355_v12  ;;  %3179 = vmatpush3.bf16.msra.mxu1 %v4372_v0 }
  0xd6   :  { %3180 = vmatprep.subr.bf16.mxu1 %v4346_v21 }
  0xd8   :  { %3079 = vmatpush1.bf16.msra.mxu0 %v4357_v60 }
  0xd9   :  { %3081 = vmatprep.subr.bf16.mxu0 %v4359_v14  ;;  %3182 = vmatpush3.bf16.msra.mxu1 %v4374_v20 }
  0xda   :  { %3183 = vmatprep.subr.bf16.mxu1 %v4346_v21 }
  0xdc   :  { %3083 = vmatpush1.bf16.msra.mxu0 %v4361_v37 }
  0xdd   :  { %3085 = vmatprep.subr.bf16.mxu0 %v4362_v32  ;;  %3185 = vmatpush3.bf16.msra.mxu1 %v4375_v9 }
  0xde   :  { %3186 = vmatprep.subr.bf16.mxu1 %v4346_v21 }
  0xe0   :  { %3087 = vmatpush1.bf16.msra.mxu0 %v4363_v42 }
  0xe1   :  { %3089 = vmatprep.subr.bf16.mxu0 %v4373_v13  ;;  %3188 = vmatpush3.bf16.msra.mxu1 %v4376_v11 }
  0xe2   :  { %3189 = vmatprep.subr.bf16.mxu1 %v4346_v21 }
  0xe4   :  { %3091 = vmatpush1.bf16.msra.mxu0 %v4366_v5 }
  0xe5   :  { %3093 = vmatprep.subr.bf16.mxu0 %v4367_v36  ;;  %3191 = vmatpush3.bf16.msra.mxu1 %v4377_v17  ;;  %v4384_v36 = vand.u32 4294901760, %v3918_v31 }
  0xe6   :  { %3192 = vmatprep.subr.bf16.mxu1 %v4346_v21 }
  0xe7   :  { %v3208_v43 = vpack.c.bf16 %v4385_v3, %v4384_v36 }
  0xe8   :  { %3095 = vmatpush1.bf16.msra.mxu0 %v4368_v41  ;;  %2772 = vmatmul.mubr.f32.vlgmr.msra.gmra.mrb[0].mxu1 %v4369_v34 }
  0xe9   :  { %2844 = vmatprep.subr.mxu0 %v4329_v25  ;;  %3194 = vmatpush3.bf16.msra.mxu1 %v4378_v29 }
  0xea   :  { %2806 = vmatprep.mubr.msk.f32.mxu1 %vm3370_vm0, %v4329_v25  ;;  %3195 = vmatprep.subr.bf16.mxu1 %v4346_v21 }
  0xeb   :  { %936 = vmatmul.mubr.f32.vlgmr.msra.gmra.mrb[0].mxu0 %v3506_v48 }
  0xec   :  { %2846 = vmatprep.mubr.msk.f32.mxu0 %vm3370_vm0, %v4329_v25 }
  0xed   :  { %3197 = vmatpush3.bf16.msra.mxu1 %v4379_v24 }
  0xee   :  { %3198 = vmatprep.subr.bf16.mxu1 %v4346_v21 }
  0xf1   :  { %3200 = vmatpush3.bf16.msra.mxu1 %v4380_v40 }
  0xf2   :  { %3201 = vmatprep.subr.bf16.mxu1 %v4346_v21 }
  0xf5   :  { %3203 = vmatpush3.bf16.msra.mxu1 %v4381_v15 }
  0xf6   :  { %3204 = vmatprep.subr.bf16.mxu1 %v4346_v21 }
  0xf9   :  { %3206 = vmatpush3.bf16.msra.mxu1 %v3205_v39 }
  0xfa   :  { %3207 = vmatprep.subr.bf16.mxu1 %v4346_v21 }
  0xfd   :  { %3209 = vmatpush3.bf16.msra.mxu1 %v3208_v43 }
  0xfe   :  { %3210 = vmatprep.subr.bf16.mxu1 %v4346_v21 }
 0x101   :  { %3212 = vmatpush3.bf16.msra.mxu1 %v3211_v4 }
 0x102   :  { %3213 = vmatprep.subr.bf16.mxu1 %v4346_v21 }
 0x105   :  { %3215 = vmatpush3.bf16.msra.mxu1 %v3214_v18 }
 0x106   :  { %3216 = vmatprep.subr.bf16.mxu1 %v4346_v21 }
 0x108   :  { %2807 = vmatmul.mubr.f32.vlgmr.msra.gmra.mrb[0].mxu1 %v3506_v48 }
 0x109   :  { %3218 = vmatpush3.bf16.msra.mxu1 %v3765_v63  ;;  %2841 = vmatprep.mubr.msk.f32.mxu1 %vm3370_vm0, %v4329_v25 }
 0x10a   :  { %3219 = vmatprep.subr.bf16.mxu1 %v4346_v21 }
 0x10d   :  { %3221 = vmatpush3.bf16.msra.mxu1 %v3772_v52 }
 0x10e   :  { %3222 = vmatprep.subr.bf16.mxu1 %v4346_v21 }
 0x111   :  { %3224 = vmatpush3.bf16.msra.mxu1 %v3780_v59 }
 0x112   :  { %3225 = vmatprep.subr.bf16.mxu1 %v4346_v21 }
 0x115   :  { %3227 = vmatpush3.bf16.msra.mxu1 %v4372_v0 }
 0x116   :  { %3228 = vmatprep.subr.bf16.mxu1 %v4346_v21 }
 0x119   :  { %3230 = vmatpush3.bf16.msra.mxu1 %v4374_v20 }
 0x11a   :  { %3231 = vmatprep.subr.bf16.mxu1 %v4346_v21 }
 0x11d   :  { %3233 = vmatpush3.bf16.msra.mxu1 %v4375_v9 }
 0x11e   :  { %3234 = vmatprep.subr.bf16.mxu1 %v4346_v21 }
 0x121   :  { %3236 = vmatpush3.bf16.msra.mxu1 %v4376_v11 }
 0x122   :  { %3237 = vmatprep.subr.bf16.mxu1 %v4346_v21 }
 0x125   :  { %3239 = vmatpush3.bf16.msra.mxu1 %v4377_v17 }
 0x126   :  { %2874 = vmatprep.subr.mxu1 %v4329_v25 }
 0x128   :  { %2842 = vmatmul.mubr.f32.vlgmr.msra.gmra.mrb[0].mxu1 %v3506_v48 }
 0x129   :  { %2876 = vmatprep.mubr.msk.f32.mxu1 %vm3370_vm0, %v4329_v25 }
 0x1be   :  { %v937_v63 = vpop.f32.mrb[0].mxu0 }
 0x1bf   :  { %v1649_v52 = vand.u32 4294901760, %v937_v63  ;;  %v939_v59 = vpop.f32.mrb[1].mxu0 }
 0x1c0   :  { %v1584_v6 = vand.u32 4294901760, %v939_v59 }
 0x1c1   :  { %v1650_v31 = vsub.f32 %v937_v63, %v1649_v52 }
 0x1c2   :  { %v1661_v2 = vsub.f32 %v939_v59, %v1584_v6  ;;  %2845 = vmatpush3.xpose.msra.mxu0 %v1584_v6 }
 0x1c3   :  { %v1651_v16 = vand.u32 4294901760, %v1650_v31  ;;  %2849 = vmatprep.subr.mxu0 %v4329_v25 }
 0x1c4   :  { %v1662_v21 = vand.u32 4294901760, %v1661_v2 }
 0x1c5   :  { %v1652_v14 = vsub.f32 %v1650_v31, %v1651_v16 }
 0x1c6   :  { %v1663_v7 = vsub.f32 %v1661_v2, %v1662_v21 }
 0x1c7   :  { %v1653_v23 = vand.u32 4294901760, %v1652_v14 }
 0x1c8   :  { %v1664_v61 = vand.u32 4294901760, %v1663_v7 }
 0x1c9   :  { %2847 = vmatmul.mubr.f32.vlgmr.msra.gmra.mrb[2].mxu0 %v1653_v23 }
 0x1ca   :  { %2850 = vmatpush3.xpose.msra.mxu0 %v1664_v61  ;;  %2851 = vmatprep.mubr.msk.f32.mxu0 %vm3370_vm0, %v4329_v25 }
 0x1cb   :  { %2854 = vmatprep.subr.mxu0 %v4329_v25 }
 0x1d1   :  { %2852 = vmatmul.mubr.f32.vlgmr.msra.gmra.mrb[2].mxu0 %v1649_v52 }
 0x1d2   :  { %2855 = vmatpush3.xpose.msra.mxu0 %v1661_v2  ;;  %2856 = vmatprep.mubr.msk.f32.mxu0 %vm3370_vm0, %v4329_v25 }
 0x1d3   :  { %2859 = vmatprep.subr.mxu0 %v4329_v25 }
 0x1d9   :  { %2857 = vmatmul.mubr.f32.vlgmr.msra.gmra.mrb[2].mxu0 %v1650_v31 }
 0x1da   :  { %2860 = vmatpush3.xpose.msra.mxu0 %v1584_v6  ;;  %2861 = vmatprep.mubr.msk.f32.mxu0 %vm3370_vm0, %v4329_v25 }
 0x1db   :  { %2864 = vmatprep.subr.mxu0 %v4329_v25 }
 0x1e1   :  { %2862 = vmatmul.mubr.f32.vlgmr.msra.gmra.mrb[2].mxu0 %v1651_v16 }
 0x1e2   :  { %2865 = vmatpush3.xpose.msra.mxu0 %v1662_v21  ;;  %2866 = vmatprep.mubr.msk.f32.mxu0 %vm3370_vm0, %v4329_v25 }
 0x1e3   :  { %2869 = vmatprep.subr.mxu0 %v4329_v25 }
 0x1e9   :  { %2867 = vmatmul.mubr.f32.vlgmr.msra.gmra.mrb[2].mxu0 %v1649_v52 }
 0x1ea   :  { %2870 = vmatpush3.xpose.msra.mxu0 %v1584_v6  ;;  %2871 = vmatprep.mubr.msk.f32.mxu0 %vm3370_vm0, %v4329_v25 }
 0x1f1   :  { %2872 = vmatmul.mubr.f32.vlgmr.msra.gmra.mrb[2].mxu0 %v1649_v52 }
 0x1fb   :  { %v1579_v48 = vpop.f32.mrb[0].mxu1 }
 0x1fc   :  { %v2043_v57 = vand.u32 4294901760, %v1579_v48  ;;  %v2843_v46 = vpop.f32.mrb[1].mxu1 }
 0x1fe   :  { %2875 = vmatpush3.msra.mxu1 %v2043_v57  ;;  %v2120_v32 = vsub.f32 %v1579_v48, %v2043_v57 }
 0x1ff   :  { %2879 = vmatprep.subr.mxu1 %v4329_v25 }
 0x200   :  { %v2121_v5 = vand.u32 4294901760, %v2120_v32 }
 0x202   :  { %v2122_v41 = vsub.f32 %v2120_v32, %v2121_v5 }
 0x204   :  { %v2123_v27 = vand.u32 4294901760, %v2122_v41 }
 0x2c4   :  { %v2025_v12 = vpop.f32.mrb[2].mxu0 }
 0x2c5   :  { %v2873_v30 = vpop.f32.mrb[3].mxu0  ;;  %v2030_v60 = vsel %vm2029_vm1, %v2025_v12, -inf }
 0x2c6   :  { %2031 = vmax.xlane.f32.xlu0 %v2030_v60 }
 0x353   :  { %v2032_v19 = vpop.xlane.xlu0 %2031 }
 0x354   :  { %v2033_v37 = vsub.f32 %v2025_v12, %v2032_v19 }
 0x356   :  { %v2034_v51 = vmul.f32 1.442695, %v2033_v37 }
 0x358   :  { %3288 = vpow2.f32 %v2034_v51 }
 0x362   :  { %v3289_v42 = vpop.eup %3288 }
 0x363   :  { %v2040_v1 = vsel %vm2029_vm1, %v3289_v42, 0  ;;  %v2036_v56 = vsel %vm2029_vm1, %v3289_v42, 0.0 }
 0x364   :  { %v2108_v50 = vand.u32 4294901760, %v2040_v1  ;;  %2037 = vadd.xlane.f32.xlu0 %v2036_v56 }
 0x366   :  { %v2109_v62 = vsub.f32 %v2040_v1, %v2108_v50 }
 0x368   :  { %v2110_v33 = vand.u32 4294901760, %v2109_v62 }
 0x36a   :  { %v2111_v53 = vsub.f32 %v2109_v62, %v2110_v33 }
 0x36c   :  { %v2112_v34 = vand.u32 4294901760, %v2111_v53 }
 0x36e   :  { %2877 = vmatmul.mubr.f32.vlgmr.msra.gmra.mrb[2].mxu1 %v2112_v34 }
 0x36f   :  { %2880 = vmatpush3.msra.mxu1 %v2123_v27  ;;  %2881 = vmatprep.mubr.msk.f32.mxu1 %vm3370_vm0, %v4329_v25 }
 0x370   :  { %2884 = vmatprep.subr.mxu1 %v4329_v25 }
 0x376   :  { %2882 = vmatmul.mubr.f32.vlgmr.msra.gmra.mrb[2].mxu1 %v2108_v50 }
 0x377   :  { %2885 = vmatpush3.msra.mxu1 %v2120_v32  ;;  %2886 = vmatprep.mubr.msk.f32.mxu1 %vm3370_vm0, %v4329_v25 }
 0x378   :  { %2889 = vmatprep.subr.mxu1 %v4329_v25 }
 0x37e   :  { %2887 = vmatmul.mubr.f32.vlgmr.msra.gmra.mrb[2].mxu1 %v2109_v62 }
 0x37f   :  { %2890 = vmatpush3.msra.mxu1 %v2043_v57  ;;  %2891 = vmatprep.mubr.msk.f32.mxu1 %vm3370_vm0, %v4329_v25 }
 0x380   :  { %2894 = vmatprep.subr.mxu1 %v4329_v25 }
 0x386   :  { %2892 = vmatmul.mubr.f32.vlgmr.msra.gmra.mrb[2].mxu1 %v2110_v33 }
 0x387   :  { %2895 = vmatpush3.msra.mxu1 %v2121_v5  ;;  %2896 = vmatprep.mubr.msk.f32.mxu1 %vm3370_vm0, %v4329_v25 }
 0x388   :  { %2899 = vmatprep.subr.mxu1 %v4329_v25 }
 0x38e   :  { %2897 = vmatmul.mubr.f32.vlgmr.msra.gmra.mrb[2].mxu1 %v2108_v50 }
 0x38f   :  { %2900 = vmatpush3.msra.mxu1 %v2043_v57  ;;  %2901 = vmatprep.mubr.msk.f32.mxu1 %vm3370_vm0, %v4329_v25 }
 0x396   :  { %2902 = vmatmul.mubr.f32.vlgmr.msra.gmra.mrb[2].mxu1 %v2108_v50 }
 0x3f1   :  { %v2038_v47 = vpop.xlane.xlu0 %2037 }
 0x3f2   :  { %3290 = vrcp.f32 %v2038_v47 }
 0x3fc   :  { %v3291_v54 = vpop.eup %3290 }
 0x469   :  { %v2484_v49 = vpop.f32.mrb[2].mxu1 }
 0x46a   :  { %v2490_v26 = vmul.f32 %v3291_v54, %v2484_v49  ;;  %v2903_v10 = vpop.f32.mrb[3].mxu1 }
 0x46c   :  { %2491 = vst [vmem:[#allocation7] sm:$0xff] %v2490_v26 }
 0x46d   :  { %3347 = shalt.err (!%p3344_p6)
}
 0x46e   :  { %s3348_s10 = scalar_lea.hbm %s4186_s2, 128 }
 0x46f   :  { %p3349_p7 = scmp.ne.s32.totalorder %s4186_s2, %s3348_s10  ;;  %p3352_p8 = scmp.lt.u32.totalorder %s3348_s10, %s4186_s2 }
 0x471   :  { %p3354_p9 = pnand %p3352_p8, %p3349_p7 }
 0x473   :  { %3357 = shalt.err (!%p3354_p9)
}
 0x474   :  { %2501 = dma.vmem_to_hbm [thread:$0]  %s2499_s6, 128, %s4186_s2, [#allocation4]  }
 0x475   :  { %3362 = dma.done.wait [#allocation4], 128  }
 0x476   :  { %3363 = vsyncadd [#allocation4], 4294967168 }
 0x477   :  { %2505 = vsyncpa [#allocation3], 1 }
 0x478   :  { %2506 = vsyncpa [#allocation6], 1 }
 0x479   :  { %2507 = vsyncpa [#allocation4], 1 }

</bundles_post_ra>
